<compile_context>
chip_gen: v5e
topology: v5e:2x2
jax: 0.10.0
libtpu: 0.0.40
codegen_flags: <defaults>
</compile_context>

<pallas_src>
import math
from functools import partial

import jax
import jax.numpy as jnp
from jax.experimental import pallas as pl
from jax.experimental.pallas import tpu as pltpu


# ----------------------------------------------------------------------------
# Config (scaled-down synthetic DINOv2 "base_reg"-like model)
# ----------------------------------------------------------------------------
PATCH_SIZE = 8
IN_CHANS = 3
EMBED_DIM = 128
NUM_HEADS = 2
HEAD_DIM = EMBED_DIM // NUM_HEADS
MLP_HIDDEN = 256
DEPTH = 2
NUM_REG_TOKENS = 4
LN_EPS = 1e-6


# ----------------------------------------------------------------------------
# Glue: pad image to multiple of patch size (matches resize_to_multiple_of_patch)
# ----------------------------------------------------------------------------
def resize_to_multiple_of_patch(image, patch_size):
    h, w = image.shape[-2:]
    new_h = math.ceil(h / patch_size) * patch_size
    new_w = math.ceil(w / patch_size) * patch_size
    pad_h = new_h - h
    pad_w = new_w - w
    pad_right = pad_w // 2
    pad_left = pad_w - pad_right
    pad_bottom = pad_h // 2
    pad_top = pad_h - pad_bottom
    return jnp.pad(
        image,
        ((0, 0), (0, 0), (pad_top, pad_bottom), (pad_left, pad_right)),
        mode="constant",
    )


# ----------------------------------------------------------------------------
# Pallas kernels
# ----------------------------------------------------------------------------
def _layer_norm(x, g, b):
    mu = jnp.mean(x, axis=-1, keepdims=True)
    var = jnp.mean((x - mu) ** 2, axis=-1, keepdims=True)
    return (x - mu) * jax.lax.rsqrt(var + LN_EPS) * g + b


def _patch_embed_kernel(p_ref, w_ref, b_ref, o_ref):
    # p: (tm, K) bf16, w: (K, D) bf16, b: (1, D) f32 -> o: (tm, D) f32
    o_ref[...] = (
        jnp.dot(p_ref[...], w_ref[...], preferred_element_type=jnp.float32)
        + b_ref[...]
    )


def _stack_kernel(
    x_ref,          # (M, D) f32 input tokens (M = B*T)
    qkv_w_ref,      # (D, 3D) bf16       (depth-sliced)
    qkv_b_ref,      # (1, 3D) f32
    proj_w_ref,     # (D, D)  bf16
    fc1_w_ref,      # (D, H)  bf16
    fc1_b_ref,      # (1, H)  f32
    fc2_w_ref,      # (H, D)  bf16
    vec_ref,        # (8, D)  f32: ln1_g, ln1_b, proj_b, ls1, ln2_g, ln2_b, fc2_b, ls2
    fnorm_ref,      # (2, D)  f32: final norm gamma / beta
    pre_ref,        # (M, D) f32 output: pre-norm tokens
    norm_ref,       # (M, D) f32 output: final-norm tokens
    x_sc,           # (M, D) f32 VMEM scratch (resident activations)
    *, batch, seq,
):
    d = pl.program_id(0)

    @pl.when(d == 0)
    def _():
        x_sc[...] = x_ref[...]

    x = x_sc[...]  # (M, D) f32

    ln1_g = vec_ref[0:1, :]
    ln1_b = vec_ref[1:2, :]
    proj_b = vec_ref[2:3, :]
    ls1 = vec_ref[3:4, :]
    ln2_g = vec_ref[4:5, :]
    ln2_b = vec_ref[5:6, :]
    fc2_b = vec_ref[6:7, :]
    ls2 = vec_ref[7:8, :]

    dim = x.shape[-1]
    hd = dim // NUM_HEADS
    scale = 1.0 / (hd ** 0.5)

    # --- attention (fused QKV matmul, per-batch/per-head score matmuls) ---
    xn = _layer_norm(x, ln1_g, ln1_b)
    qkv = (
        jnp.dot(xn.astype(jnp.bfloat16), qkv_w_ref[...],
                preferred_element_type=jnp.float32)
        + qkv_b_ref[...]
    )  # (M, 3D) f32

    per_batch = []
    for b in range(batch):  # static unrolled (tiny B)
        rows = qkv[b * seq:(b + 1) * seq, :]
        q = rows[:, 0:dim]
        k = rows[:, dim:2 * dim]
        v = rows[:, 2 * dim:3 * dim]
        heads = []
        for h in range(NUM_HEADS):  # static unrolled
            qh = (q[:, h * hd:(h + 1) * hd] * scale).astype(jnp.bfloat16)
            kh = k[:, h * hd:(h + 1) * hd].astype(jnp.bfloat16)
            vh = v[:, h * hd:(h + 1) * hd].astype(jnp.bfloat16)
            # contract head dim directly (no explicit transpose)
            s = jax.lax.dot_general(
                qh, kh, (((1,), (1,)), ((), ())),
                preferred_element_type=jnp.float32,
            )  # (T, T) f32
            s = s - jnp.max(s, axis=-1, keepdims=True)
            p = jnp.exp(s)
            p = p * pl.reciprocal(jnp.sum(p, axis=-1, keepdims=True), approx=True)
            heads.append(
                jnp.dot(p.astype(jnp.bfloat16), vh,
                        preferred_element_type=jnp.float32)
            )
        per_batch.append(jnp.concatenate(heads, axis=-1))  # (T, D)
    attn = jnp.concatenate(per_batch, axis=0)  # (M, D) f32

    attn_out = (
        jnp.dot(attn.astype(jnp.bfloat16), proj_w_ref[...],
                preferred_element_type=jnp.float32)
        + proj_b
    )
    x = x + ls1 * attn_out

    # --- MLP ---
    xn2 = _layer_norm(x, ln2_g, ln2_b)
    h1 = (
        jnp.dot(xn2.astype(jnp.bfloat16), fc1_w_ref[...],
                preferred_element_type=jnp.float32)
        + fc1_b_ref[...]
    )
    # TODO(synk): DINOv2 uses exact-erf GELU; tanh approximation used here.
    h1 = jax.nn.gelu(h1, approximate=True)
    h2 = (
        jnp.dot(h1.astype(jnp.bfloat16), fc2_w_ref[...],
                preferred_element_type=jnp.float32)
        + fc2_b
    )
    x = x + ls2 * h2

    x_sc[...] = x

    @pl.when(d == pl.num_programs(0) - 1)
    def _():
        pre_ref[...] = x
        norm_ref[...] = _layer_norm(x, fnorm_ref[0:1, :], fnorm_ref[1:2, :])


# ----------------------------------------------------------------------------
# Pallas wrappers
# ----------------------------------------------------------------------------
def pallas_patch_embed(patches, w, b):
    # patches: (M, K) bf16, w: (K, D) bf16, b: (1, D) f32 -> (M, D) f32
    M, K = patches.shape
    _, D = w.shape
    tm = 256 if (M >= 256 and M % 256 == 0) else M
    return pl.pallas_call(
        _patch_embed_kernel,
        out_shape=jax.ShapeDtypeStruct((M, D), jnp.float32),
        grid=(M // tm,),
        in_specs=[
            pl.BlockSpec((tm, K), lambda i: (i, 0)),
            pl.BlockSpec((K, D), lambda i: (0, 0)),
            pl.BlockSpec((1, D), lambda i: (0, 0)),
        ],
        out_specs=pl.BlockSpec((tm, D), lambda i: (i, 0)),
        compiler_params=pltpu.CompilerParams(dimension_semantics=("parallel",)),
    )(patches, w, b)


def pallas_vit_stack(x_flat, stk, final_norm, *, batch, seq):
    # Single fused call: all transformer blocks + final LayerNorm.
    M, D = x_flat.shape
    depth = stk["qkv_w"].shape[0]
    Hm = stk["fc1_w"].shape[-1]
    kernel = partial(_stack_kernel, batch=batch, seq=seq)
    return pl.pallas_call(
        kernel,
        out_shape=(
            jax.ShapeDtypeStruct((M, D), jnp.float32),  # pre-norm
            jax.ShapeDtypeStruct((M, D), jnp.float32),  # final-norm
        ),
        grid=(depth,),
        in_specs=[
            pl.BlockSpec((M, D), lambda d: (0, 0)),                 # x
            pl.BlockSpec((None, D, 3 * D), lambda d: (d, 0, 0)),    # qkv_w
            pl.BlockSpec((None, 1, 3 * D), lambda d: (d, 0, 0)),    # qkv_b
            pl.BlockSpec((None, D, D), lambda d: (d, 0, 0)),        # proj_w
            pl.BlockSpec((None, D, Hm), lambda d: (d, 0, 0)),       # fc1_w
            pl.BlockSpec((None, 1, Hm), lambda d: (d, 0, 0)),       # fc1_b
            pl.BlockSpec((None, Hm, D), lambda d: (d, 0, 0)),       # fc2_w
            pl.BlockSpec((None, 8, D), lambda d: (d, 0, 0)),        # vec bundle
            pl.BlockSpec((2, D), lambda d: (0, 0)),                 # final norm g/b
        ],
        out_specs=[
            pl.BlockSpec((M, D), lambda d: (0, 0)),
            pl.BlockSpec((M, D), lambda d: (0, 0)),
        ],
        scratch_shapes=[pltpu.VMEM((M, D), jnp.float32)],
        compiler_params=pltpu.CompilerParams(dimension_semantics=("arbitrary",)),
    )(
        x_flat,
        stk["qkv_w"], stk["qkv_b"], stk["proj_w"],
        stk["fc1_w"], stk["fc1_b"], stk["fc2_w"],
        stk["vec"], final_norm,
    )


# ----------------------------------------------------------------------------
# Deterministic parameter initialization (synthetic weights, fused layouts)
# ----------------------------------------------------------------------------
def init_params(key, nph, npw):
    D, P, C, Hm = EMBED_DIM, PATCH_SIZE, IN_CHANS, MLP_HIDDEN
    n_patches = nph * npw
    ks = jax.random.split(key, 6 + DEPTH)
    std = 0.02

    def nrm(k, shape, dtype=jnp.float32):
        return (std * jax.random.normal(k, shape, jnp.float32)).astype(dtype)

    params = {
        "patch_embed_w": nrm(ks[0], (C * P * P, D), jnp.bfloat16),
        "patch_embed_b": nrm(ks[1], (1, D)),
        "cls_token": nrm(ks[2], (1, 1, D)),
        "reg_tokens": nrm(ks[3], (1, NUM_REG_TOKENS, D)),
        # TODO(synk): real DINOv2 interpolates pos_embed for other resolutions.
        "pos_embed": nrm(ks[4], (1, 1 + n_patches, D)),
        "mask_token": nrm(ks[5], (1, D)),
        "final_norm": jnp.concatenate(
            [jnp.ones((1, D), jnp.float32), jnp.zeros((1, D), jnp.float32)], axis=0
        ),
    }

    qkv_w, qkv_b, proj_w, fc1_w, fc1_b, fc2_w, vec = [], [], [], [], [], [], []
    for d in range(DEPTH):
        bk = jax.random.split(ks[6 + d], 5)
        qkv_w.append(nrm(bk[0], (D, 3 * D), jnp.bfloat16))
        qkv_b.append(nrm(bk[1], (1, 3 * D)))
        proj_w.append(nrm(bk[2], (D, D), jnp.bfloat16))
        fc1_w.append(nrm(bk[3], (D, Hm), jnp.bfloat16))
        fc1_b.append(jnp.zeros((1, Hm), jnp.float32))
        fc2_w.append(nrm(bk[4], (Hm, D), jnp.bfloat16))
        vec.append(
            jnp.stack(
                [
                    jnp.ones((D,), jnp.float32),          # ln1_g
                    jnp.zeros((D,), jnp.float32),         # ln1_b
                    jnp.zeros((D,), jnp.float32),         # proj_b
                    0.1 * jnp.ones((D,), jnp.float32),    # ls1 (LayerScale)
                    jnp.ones((D,), jnp.float32),          # ln2_g
                    jnp.zeros((D,), jnp.float32),         # ln2_b
                    jnp.zeros((D,), jnp.float32),         # fc2_b
                    0.1 * jnp.ones((D,), jnp.float32),    # ls2 (LayerScale)
                ],
                axis=0,
            )
        )

    params["stacked"] = {
        "qkv_w": jnp.stack(qkv_w, axis=0),
        "qkv_b": jnp.stack(qkv_b, axis=0),
        "proj_w": jnp.stack(proj_w, axis=0),
        "fc1_w": jnp.stack(fc1_w, axis=0),
        "fc1_b": jnp.stack(fc1_b, axis=0),
        "fc2_w": jnp.stack(fc2_w, axis=0),
        "vec": jnp.stack(vec, axis=0),
    }
    return params


# ----------------------------------------------------------------------------
# Forward pass (mirrors DinoV2FeatureExtractor._forward / forward_features)
# ----------------------------------------------------------------------------
def dino_feature_extractor_forward(params, image, mask=None, pre=True, hierarchy=0):
    if hierarchy > 0:
        # TODO(synk): jax.image.resize bicubic differs slightly from torch
        # F.interpolate(align_corners=False) boundary handling.
        B, C, H, W = image.shape
        image = jax.image.resize(
            image, (B, C, H * 2 ** hierarchy, W * 2 ** hierarchy), method="bicubic"
        )

    image = resize_to_multiple_of_patch(image, PATCH_SIZE)
    B, C, H, W = image.shape
    nph, npw = H // PATCH_SIZE, W // PATCH_SIZE
    n_patches = nph * npw
    D, P = EMBED_DIM, PATCH_SIZE

    # --- patch embedding: conv(P, stride=P) as patch extraction + Pallas matmul
    patches = image.reshape(B, C, nph, P, npw, P)
    patches = patches.transpose(0, 2, 4, 1, 3, 5).reshape(B * n_patches, C * P * P)
    tokens = pallas_patch_embed(
        patches.astype(jnp.bfloat16),
        params["patch_embed_w"],
        params["patch_embed_b"],
    ).reshape(B, n_patches, D)

    if mask is not None:
        mask = mask.astype(jnp.bool_).reshape(B, -1)
        tokens = jnp.where(mask[..., None], params["mask_token"][None], tokens)

    # --- cls token + positional embedding, then insert register tokens
    cls = jnp.broadcast_to(params["cls_token"], (B, 1, D))
    x = jnp.concatenate([cls, tokens], axis=1) + params["pos_embed"]
    regs = jnp.broadcast_to(params["reg_tokens"], (B, NUM_REG_TOKENS, D))
    x = jnp.concatenate([x[:, :1], regs, x[:, 1:]], axis=1)  # (B, T, D)
    T = 1 + NUM_REG_TOKENS + n_patches

    # --- fused transformer stack + final LayerNorm (single Pallas call)
    x_flat = x.reshape(B * T, D)
    pre_flat, norm_flat = pallas_vit_stack(
        x_flat, params["stacked"], params["final_norm"], batch=B, seq=T
    )
    x_prenorm = pre_flat.reshape(B, T, D)
    x_norm = norm_flat.reshape(B, T, D)

    nr = NUM_REG_TOKENS
    output = {
        "cls": x_norm[:, 0],
        "reg": x_norm[:, 1:nr + 1],
        "patch": x_norm[:, nr + 1:].reshape(-1, nph, npw, D),
        "mask": mask,
    }
    if pre:
        output["pre_cls"] = x_prenorm[:, 0]
        output["pre_reg"] = x_prenorm[:, 1:nr + 1]
        output["pre_patch"] = x_prenorm[:, nr + 1:].reshape(-1, nph, npw, D)
    return output


# ----------------------------------------------------------------------------
# Main
# ----------------------------------------------------------------------------
if __name__ == "__main__":
    key = jax.random.PRNGKey(0)
    k_img, k_par = jax.random.split(key)

    # small NCHW image; 30x30 gets padded to 32x32 -> 4x4 patches of size 8
    image = jax.random.normal(k_img, (2, IN_CHANS, 30, 30), jnp.float32)

    padded_h = math.ceil(30 / PATCH_SIZE) * PATCH_SIZE
    nph = npw = padded_h // PATCH_SIZE
    params = init_params(k_par, nph, npw)

    out = dino_feature_extractor_forward(params, image, mask=None, pre=True, hierarchy=0)

    for v in jax.tree_util.tree_leaves(out):
        jax.block_until_ready(v)

    # sanity: shape checks consistent with the PyTorch module's output dict
    assert out["cls"].shape == (2, EMBED_DIM)
    assert out["reg"].shape == (2, NUM_REG_TOKENS, EMBED_DIM)
    assert out["patch"].shape == (2, nph, npw, EMBED_DIM)
    assert out["pre_cls"].shape == (2, EMBED_DIM)
    assert out["pre_reg"].shape == (2, NUM_REG_TOKENS, EMBED_DIM)
    assert out["pre_patch"].shape == (2, nph, npw, EMBED_DIM)
    assert bool(jnp.all(jnp.isfinite(out["cls"]))) and bool(jnp.all(jnp.isfinite(out["patch"])))

    print("KERNEL_OK")
</pallas_src>

<mosaic_0001>
module attributes {stable_mosaic.version = 11 : i64} {
  func.func @_patch_embed_kernel(%arg0: i32, %arg1: memref<32x192xbf16, #tpu.memory_space<vmem>>, %arg2: memref<192x128xbf16, #tpu.memory_space<vmem>>, %arg3: memref<1x128xf32, #tpu.memory_space<vmem>>, %arg4: memref<32x128xf32, #tpu.memory_space<vmem>>) attributes {dimension_semantics = [#tpu.dimension_semantics<parallel>], iteration_bounds = array<i64: 1>, scalar_prefetch = 0 : i64, scratch_operands = 0 : i64, tpu.core_type = #tpu.core_type<tc>, window_params = [{transform_indices = @transform_0, window_bounds = array<i64: 32, 192>}, {pipeline_mode = #tpu.pipeline_mode<synchronous>, transform_indices = @transform_1, window_bounds = array<i64: 192, 128>}, {pipeline_mode = #tpu.pipeline_mode<synchronous>, transform_indices = @transform_2, window_bounds = array<i64: 1, 128>}, {transform_indices = @transform_3, window_bounds = array<i64: 32, 128>}]} {
    %c0 = arith.constant 0 : index
    %c0_0 = arith.constant 0 : index
    %0 = vector.load %arg1[%c0, %c0_0] : memref<32x192xbf16, #tpu.memory_space<vmem>>, vector<32x192xbf16>
    %c0_1 = arith.constant 0 : index
    %c0_2 = arith.constant 0 : index
    %1 = vector.load %arg2[%c0_1, %c0_2] : memref<192x128xbf16, #tpu.memory_space<vmem>>, vector<192x128xbf16>
    %cst = arith.constant dense<0.000000e+00> : vector<32x128xf32>
    %2 = tpu.matmul %0, %1, %cst {dimension_numbers = #tpu.dot_dimension_numbers<[1], [0], [0], [1], [0, 0, 1, 1], [], []>} : vector<32x192xbf16>, vector<192x128xbf16>, vector<32x128xf32> -> vector<32x128xf32>
    %c0_3 = arith.constant 0 : index
    %c0_4 = arith.constant 0 : index
    %3 = vector.load %arg3[%c0_3, %c0_4] : memref<1x128xf32, #tpu.memory_space<vmem>>, vector<1x128xf32>
    %4 = vector.broadcast %3 : vector<1x128xf32> to vector<32x128xf32>
    %5 = arith.addf %2, %4 : vector<32x128xf32>
    %c0_5 = arith.constant 0 : index
    %c0_6 = arith.constant 0 : index
    %6 = vector.load %arg4[%c0_5, %c0_6] : memref<32x128xf32, #tpu.memory_space<vmem>>, vector<32x128xf32>
    tpu.vector_store %arg4[%c0_5, %c0_6], %5 {strides = array<i32>} : memref<32x128xf32, #tpu.memory_space<vmem>>, vector<32x128xf32>,
    return
  }
  func.func @transform_0(%arg0: i32) -> (i32, i32) {
    %c0_i32 = arith.constant 0 : i32
    %c0_i32_0 = arith.constant 0 : i32
    return %arg0, %c0_i32 : i32, i32
  }
  func.func @transform_1(%arg0: i32) -> (i32, i32) {
    %c0_i32 = arith.constant 0 : i32
    %c0_i32_0 = arith.constant 0 : i32
    %c0_i32_1 = arith.constant 0 : i32
    return %c0_i32, %c0_i32_0 : i32, i32
  }
  func.func @transform_2(%arg0: i32) -> (i32, i32) {
    %c0_i32 = arith.constant 0 : i32
    %c0_i32_0 = arith.constant 0 : i32
    %c0_i32_1 = arith.constant 0 : i32
    return %c0_i32, %c0_i32_0 : i32, i32
  }
  func.func @transform_3(%arg0: i32) -> (i32, i32) {
    %c0_i32 = arith.constant 0 : i32
    %c0_i32_0 = arith.constant 0 : i32
    return %arg0, %c0_i32 : i32, i32
  }
}

</mosaic_0001>

<bundles_post_ra>
// kernel: tpu_custom_call.1
= control target key start
LH: loop header
LB: loop body
LE: loop exit
PB: predicated region body
PF: predicated region fallthrough
CT: control target
= control target key end

     0   :  { %8 = vsyncpa [#allocation3], 0  ;;  %s462_s0 = inlined_call_operand.hbm [shape: bf16[32,192], index: 0, kind: input, shape index: {}]   ;;  %s463_s1 = inlined_call_operand.hbm [shape: bf16[192,128], index: 1, kind: input, shape index: {}]   ;;  %s464_s2 = inlined_call_operand.vmem [shape: f32[1,128], index: 2, kind: input, shape index: {}]   ;;  %s465_s3 = inlined_call_operand.hbm [shape: f32[32,128], index: 3, kind: output, shape index: {}]  }
   0x1   :  { %9 = vsyncpa [#allocation6], 0 }
   0x2   :  { %10 = vsyncpa [#allocation4], 0  ;;  %s15_s14 = sshll.u32 %s462_s0, 4  ;;  %s415_s15 = smov [#allocation2]   ;;  %s16_s14 = int_to_ptr.hbm [resolvable:$true] %s15_s14 }
   0x3   :  { %s17_s16 = sshll.u32 %s415_s15, 4  ;;  %s28_s19 = sshll.u32 %s463_s1, 4  ;;  %s18_s16 = int_to_ptr.vmem [resolvable:$true] %s17_s16  ;;  %s29_s19 = int_to_ptr.hbm [resolvable:$true] %s28_s19 }
   0x4   :  { %s416_s20 = smov 128   ;;  %s417_s21 = smov 8  }
   0x5   :  { %23 = dma.hbm_to_vmem [thread:$0]  %s16_s14, 512, %s18_s16, [#allocation3], %s416_s20, %s416_s20, %s417_s21  }
   0x6   :  { %s418_s22 = smov [#allocation5]   ;;  %s419_s24 = smov 64  }
   0x7   :  { %s30_s23 = sshll.u32 %s418_s22, 4  ;;  %s420_s0 = smov 4   ;;  %s31_s23 = int_to_ptr.vmem [resolvable:$true] %s30_s23 }
   0x8   :  { %36 = dma.hbm_to_vmem [thread:$0]  %s29_s19, 1536, %s31_s23, [#allocation6], %s419_s24, %s419_s24, %s420_s0  }
   0x9   :  { %409 = dma.done.wait [#allocation3], 512  }
   0xa   :  { %410 = vsyncadd [#allocation3], 4294966784 }
   0xb   :  { %411 = dma.done.wait [#allocation6], 1536  }
   0xc   :  { %412 = vsyncadd [#allocation6], 4294965760  ;;  %v316_v0 = vld [vmem:[#allocation5 + $0x38] sm:$0xff]  ;;  %v315_v2 = vld [vmem:[#allocation5 + $0x30] sm:$0xff]  ;;  %vm170_vm0 = vcmask 523264   ;;  %s421_s26 = smov [#allocation7]  }
   0xd   :  { %v320_v1 = vld [vmem:[#allocation5 + $0x58] sm:$0xff]  ;;  %177 = vmatpush.bf16.msra.mxu0 %v316_v0  ;;  %321 = vmatpush.bf16.msra.mxu2 %v316_v0  ;;  %v319_v3 = vld [vmem:[#allocation5 + $0x50] sm:$0xff]  ;;  %v314_v4 = vld [vmem:[#allocation5 + $0x28] sm:$0xff]  ;;  %s223_s27 = sshll.u32 %s421_s26, 4  ;;  %s224_s27 = int_to_ptr.vmem [resolvable:$true] %s223_s27 }
   0xe   :  { %200 = vmatpush.bf16.msra.mxu1 %v320_v1  ;;  %v318_v5 = vld [vmem:[#allocation5 + $0x48] sm:$0xff]  ;;  %v313_v6 = vld [vmem:[#allocation5 + $0x20] sm:$0xff]  ;;  %v312_v11 = vld [vmem:[#allocation5 + $0x18] sm:$0xff] }
   0xf   :  { %v317_v7 = vld [vmem:[#allocation5 + $0x40] sm:$0xff]  ;;  %v243_v9 = vld [vmem:[#allocation2 + $0x8] sm:$0xf0]  ;;  %v311_v12 = vld [vmem:[#allocation5 + $0x10] sm:$0xff] }
  0x10   :  { %v305_v8 = vld [vmem:[#allocation2 + $0x4] sm:$0xf]  ;;  %v310_v13 = vld [vmem:[#allocation5 + $0x8] sm:$0xff]  ;;  %v241_v15 = vld [vmem:[#allocation2] sm:$0xf] }
  0x11   :  { %178 = vmatpush.bf16.msra.mxu0 %v315_v2  ;;  %322 = vmatpush.bf16.msra.mxu2 %v315_v2  ;;  %v246_v10 = vor.u32 %v305_v8, %v243_v9  ;;  %v309_v14 = vld [vmem:[#allocation5] sm:$0xff]  ;;  %v306_v16 = vld [vmem:[#allocation2 + $0x4] sm:$0xf0]  ;;  %v249_v17 = vld [vmem:[#allocation2 + $0x10] sm:$0xf] }
  0x12   :  { %201 = vmatpush.bf16.msra.mxu1 %v319_v3  ;;  %v308_v18 = vld [vmem:[#allocation2 + $0x14] sm:$0xf0]  ;;  %v307_v19 = vld [vmem:[#allocation2 + $0x14] sm:$0xf]  ;;  %v251_v20 = vld [vmem:[#allocation2 + $0x18] sm:$0xf0]  ;;  %v242_v21 = vor.u32 %v306_v16, %v241_v15 }
  0x13   :  { %v250_v22 = vor.u32 %v308_v18, %v249_v17  ;;  %v254_v23 = vor.u32 %v307_v19, %v251_v20  ;;  %v336_v26 = vld [vmem:[%s464_s2] ss:$0 sm:$0xff]  ;;  %s225_s2 = sshll.u32 %s465_s3, 4  ;;  %s226_s2 = int_to_ptr.hbm [resolvable:$true] %s225_s2 }
  0x15   :  { %179 = vmatpush.bf16.msra.mxu0 %v314_v4  ;;  %323 = vmatpush.bf16.msra.mxu2 %v314_v4 }
  0x16   :  { %202 = vmatpush.bf16.msra.mxu1 %v318_v5 }
  0x19   :  { %180 = vmatpush.bf16.msra.mxu0 %v313_v6  ;;  %324 = vmatpush.bf16.msra.mxu2 %v313_v6 }
  0x1a   :  { %203 = vmatpush.bf16.msra.mxu1 %v317_v7 }
  0x1d   :  { %303 = vmatmul.msk.bf16.vlgmr.msra.gmra.mxu1 %vm170_vm0, %v246_v10  ;;  %181 = vmatpush.bf16.msra.mxu0 %v312_v11 }
  0x1e   :  { %325 = vmatpush.bf16.msra.mxu2 %v312_v11 }
  0x21   :  { %182 = vmatpush.bf16.msra.mxu0 %v311_v12 }
  0x22   :  { %326 = vmatpush.bf16.msra.mxu2 %v311_v12 }
  0x25   :  { %183 = vmatpush.bf16.msra.mxu0 %v310_v13 }
  0x26   :  { %327 = vmatpush.bf16.msra.mxu2 %v310_v13 }
  0x29   :  { %184 = vmatpush.bf16.msra.mxu0 %v309_v14 }
  0x2a   :  { %328 = vmatpush.bf16.msra.mxu2 %v309_v14 }
  0x2c   :  { %185 = vmatmul.bf16.vlgmr.msra.gmra.mxu0 %v242_v21 }
  0x2d   :  { %190 = vmatmul.bf16.vlgmr.msra.gmra.mxu2 %v250_v22  ;;  %304 = vmatmul.msk.bf16.gmra.mxu1 %vm170_vm0, %v254_v23 }
  0x9a   :  { %v205_v24 = vpop.f32.mrf.mxu1 }
  0xa2   :  { %v207_v25 = vpop.f32.mrf.mxu1 }
  0xa9   :  { %v186_v27 = vpop.f32.mrf.mxu0 }
  0xaa   :  { %v187_v28 = vadd.f32 %v336_v26, %v186_v27  ;;  %v210_v30 = vpop.f32.mrf.mxu1 }
  0xac   :  { %v206_v29 = vadd.f32 %v205_v24, %v187_v28 }
  0xae   :  { %215 = vst [vmem:[#allocation7] sm:$0xff] %v206_v29 }
  0xb0   :  { %v191_v31 = vpop.f32.mrf.mxu2 }
  0xb1   :  { %v192_v32 = vadd.f32 %v336_v26, %v191_v31  ;;  %v188_v33 = vpop.f32.mrf.mxu0 }
  0xb2   :  { %v189_v34 = vadd.f32 %v336_v26, %v188_v33  ;;  %v212_v39 = vpop.f32.mrf.mxu1 }
  0xb3   :  { %v211_v35 = vadd.f32 %v210_v30, %v192_v32 }
  0xb4   :  { %v208_v36 = vadd.f32 %v207_v25, %v189_v34 }
  0xb5   :  { %217 = vst [vmem:[#allocation7 + $0x10] sm:$0xff] %v211_v35 }
  0xb6   :  { %216 = vst [vmem:[#allocation7 + $0x8] sm:$0xff] %v208_v36 }
  0xb8   :  { %v193_v37 = vpop.f32.mrf.mxu2 }
  0xb9   :  { %v194_v38 = vadd.f32 %v336_v26, %v193_v37 }
  0xbb   :  { %v213_v40 = vadd.f32 %v212_v39, %v194_v38 }
  0xbd   :  { %218 = vst [vmem:[#allocation7 + $0x18] sm:$0xff] %v213_v40 }
  0xbe   :  { %231 = dma.vmem_to_hbm [thread:$0]  %s224_s27, 512, %s226_s2, [#allocation4], %s416_s20, %s416_s20, %s417_s21  }
  0xbf   :  { %413 = dma.done.wait [#allocation4], 512  }
  0xc0   :  { %414 = vsyncadd [#allocation4], 4294966784 }
  0xc1   :  { %236 = vsyncpa [#allocation3], 1 }
  0xc2   :  { %237 = vsyncpa [#allocation6], 1 }
  0xc3   :  { %238 = vsyncpa [#allocation4], 1 }

</bundles_post_ra>
